<compile_context>
chip_gen: v5e
topology: v5e:2x2
jax: 0.10.0
libtpu: 0.0.40
codegen_flags: <defaults>
</compile_context>

<pallas_src>
import functools

import jax
import jax.numpy as jnp
from jax.experimental import pallas as pl
from jax.experimental.pallas import tpu as pltpu


_VMEM_LIMIT_BYTES = 48 * 1024 * 1024  # below v7x 64 MiB physical, above default scoped limits


# ----------------------------------------------------------------------------
# Kernel 1: tied LinearPooler  reps = cls @ W + b
# ----------------------------------------------------------------------------
def _pooler_kernel(cls_ref, w_ref, b_ref, reps_ref, reps16_ref):
    # cls_ref: (tm, H) f32   w_ref: (H, D) bf16 (pre-cast once in wrapper)   b_ref: (1, D) f32
    x16 = cls_ref[...].astype(jnp.bfloat16)
    r = jnp.dot(x16, w_ref[...], preferred_element_type=jnp.float32) + b_ref[...]
    reps_ref[...] = r                               # f32 module output
    reps16_ref[...] = r.astype(jnp.bfloat16)        # bf16 operand for the scores kernel


def linear_pooler(cls_rows, w_bf16, b_row, *, tm=None):
    B, H = cls_rows.shape
    D = w_bf16.shape[1]
    if tm is None:
        tm = B if B <= 256 else 256                 # 256-wide tiles for v6e/v7x MXU
    nm = pl.cdiv(B, tm)

    flops = 2 * B * H * D
    bytes_accessed = 4 * B * H + 2 * H * D + 4 * D + 6 * B * D

    reps, reps16 = pl.pallas_call(
        _pooler_kernel,
        out_shape=(
            jax.ShapeDtypeStruct((B, D), jnp.float32),
            jax.ShapeDtypeStruct((B, D), jnp.bfloat16),
        ),
        grid=(nm,),
        in_specs=[
            pl.BlockSpec((tm, H), lambda i: (i, 0)),
            # constant-index operands: DMA'd once, single-buffered
            pl.BlockSpec((H, D), lambda i: (0, 0), pipeline_mode=pl.Buffered(1)),
            pl.BlockSpec((1, D), lambda i: (0, 0), pipeline_mode=pl.Buffered(1)),
        ],
        out_specs=(
            pl.BlockSpec((tm, D), lambda i: (i, 0)),
            pl.BlockSpec((tm, D), lambda i: (i, 0)),
        ),
        compiler_params=pltpu.CompilerParams(
            dimension_semantics=("parallel",),
            vmem_limit_bytes=_VMEM_LIMIT_BYTES,
        ),
        cost_estimate=pl.CostEstimate(
            flops=flops, transcendentals=0, bytes_accessed=bytes_accessed
        ),
    )(cls_rows, w_bf16, b_row)
    return reps, reps16


# ----------------------------------------------------------------------------
# Kernel 2: in-batch scores + cross-entropy loss (Bp-tiled online softmax)
# ----------------------------------------------------------------------------
def _scores_loss_kernel(
    q16_ref,      # (tq, D)  bf16 query reps tile
    p16_ref,      # (tp, D)  bf16 passage reps tile
    scores_ref,   # out (tq, tp) f32
    loss_ref,     # out (1, 8, 128) f32 — per-Bq-tile partial loss (lane-dense)
    m_sc,         # scratch (tq, 1) running max
    l_sc,         # scratch (tq, 1) running softmax denominator
    t_sc,         # scratch (tq, 1) target-column logit
    *, n_passages, bq, bp, tq, tp):
    i = pl.program_id(0)
    j = pl.program_id(1)

    @pl.when(j == 0)
    def _():
        m_sc[...] = jnp.full_like(m_sc, -jnp.inf)
        l_sc[...] = jnp.zeros_like(l_sc)
        t_sc[...] = jnp.zeros_like(t_sc)

    # NT contraction (same pattern as flash-attention q·kᵀ): no materialized transpose.
    s = jax.lax.dot_general(
        q16_ref[...], p16_ref[...],
        dimension_numbers=(((1,), (1,)), ((), ())),
        preferred_element_type=jnp.float32,
    )                                                                  # (tq, tp) f32
    scores_ref[...] = s

    col = jax.lax.broadcasted_iota(jnp.int32, s.shape, 1) + j * tp     # global passage col
    row = jax.lax.broadcasted_iota(jnp.int32, s.shape, 0) + i * tq     # global query row
    s_sm = jnp.where(col < bp, s, -1e30)                               # mask padded columns

    m_prev = m_sc[...]
    m_new = jnp.maximum(m_prev, jnp.max(s_sm, axis=1, keepdims=True))
    p = jnp.exp(s_sm - m_new)
    l_sc[...] = jnp.exp(m_prev - m_new) * l_sc[...] + jnp.sum(p, axis=1, keepdims=True)
    m_sc[...] = m_new

    # target[global_row] = global_row * n_passages — lands in exactly one Bp tile
    t_sc[...] += jnp.sum(jnp.where(col == row * n_passages, s, 0.0),
                         axis=1, keepdims=True)

    @pl.when(j == pl.num_programs(1) - 1)
    def _():
        per_row = m_sc[...] + jnp.log(l_sc[...]) - t_sc[...]           # (tq, 1)
        r = jax.lax.broadcasted_iota(jnp.int32, per_row.shape, 0) + i * tq
        part = jnp.sum(jnp.where(r < bq, per_row, 0.0)) * (1.0 / bq)
        loss_ref[...] = jnp.broadcast_to(part, loss_ref.shape)


def scores_and_loss(q16, p16, n_passages, *, tq=None, tp=None):
    Bq, D = q16.shape
    Bp, _ = p16.shape
    if tq is None:
        tq = Bq if Bq <= 256 else 256
    if tp is None:
        tp = Bp if Bp <= 512 else 512
    nq = pl.cdiv(Bq, tq)
    npb = pl.cdiv(Bp, tp)

    kernel = functools.partial(
        _scores_loss_kernel, n_passages=int(n_passages), bq=Bq, bp=Bp, tq=tq, tp=tp
    )

    flops = 2 * Bq * Bp * D
    transcendentals = Bq * Bp + Bq
    bytes_accessed = 2 * (Bq * D + nq * Bp * D) + 4 * Bq * Bp + 4 * nq * 8 * 128

    scores, loss_parts = pl.pallas_call(
        kernel,
        out_shape=(
            jax.ShapeDtypeStruct((Bq, Bp), jnp.float32),       # scores == view(effective_bsz, -1)
            jax.ShapeDtypeStruct((nq, 8, 128), jnp.float32),   # per-Bq-tile partial losses
        ),
        grid=(nq, npb),
        in_specs=[
            pl.BlockSpec((tq, D), lambda i, j: (i, 0)),
            pl.BlockSpec((tp, D), lambda i, j: (j, 0)),
        ],
        out_specs=(
            pl.BlockSpec((tq, tp), lambda i, j: (i, j)),
            pl.BlockSpec((1, 8, 128), lambda i, j: (i, 0, 0)),  # written once at j == last
        ),
        scratch_shapes=[
            pltpu.VMEM((tq, 1), jnp.float32),   # running max
            pltpu.VMEM((tq, 1), jnp.float32),   # running denominator
            pltpu.VMEM((tq, 1), jnp.float32),   # target logit
        ],
        compiler_params=pltpu.CompilerParams(
            # Bq axis has no cross-iteration carry -> "parallel" (v7x megacore);
            # Bp axis carries the online-softmax accumulators -> "arbitrary".
            dimension_semantics=("parallel", "arbitrary"),
            vmem_limit_bytes=_VMEM_LIMIT_BYTES,
        ),
        cost_estimate=pl.CostEstimate(
            flops=flops, transcendentals=transcendentals, bytes_accessed=bytes_accessed
        ),
    )(q16, p16)

    loss = jnp.sum(loss_parts[:, 0, 0])
    return scores, loss


# ----------------------------------------------------------------------------
# DenseModel.forward (training path, tied LinearPooler)
# ----------------------------------------------------------------------------
def dense_model_forward(q_hidden, p_hidden, pooler_w, pooler_b, n_passages):
    Bq, Sq, H = q_hidden.shape
    Bp, Sp, _ = p_hidden.shape
    D = pooler_w.shape[1]
    # target columns are row * n_passages; they must index into the passage batch
    assert Bp == Bq * int(n_passages), "expected Bp == Bq * train_n_passages"

    # CLS selection in the wrapper: only [B, H] rows ever reach the kernels.
    q_cls = q_hidden[:, 0, :]
    p_cls = p_hidden[:, 0, :]

    # pooler weight cast to bf16 once (MXU operand); bias stays f32 for the epilogue add.
    w16 = pooler_w.astype(jnp.bfloat16)
    b_row = pooler_b.reshape(1, D)

    q_reps, q16 = linear_pooler(q_cls, w16, b_row)
    p_reps, p16 = linear_pooler(p_cls, w16, b_row)

    # NOTE: in production pad Bp (and D) to multiples of 128 so the scores stores stay lane-dense.
    scores, loss = scores_and_loss(q16, p16, n_passages)

    return {"loss": loss, "scores": scores, "q_reps": q_reps, "p_reps": p_reps}


# ----------------------------------------------------------------------------
# Pure-JAX reference (same bf16-operand / f32-accumulate precision policy)
# ----------------------------------------------------------------------------
def _reference(q_hidden, p_hidden, w, b, n_passages):
    w16 = w.astype(jnp.bfloat16)
    q_reps = jnp.dot(q_hidden[:, 0, :].astype(jnp.bfloat16), w16,
                     preferred_element_type=jnp.float32) + b
    p_reps = jnp.dot(p_hidden[:, 0, :].astype(jnp.bfloat16), w16,
                     preferred_element_type=jnp.float32) + b
    scores = jax.lax.dot_general(
        q_reps.astype(jnp.bfloat16), p_reps.astype(jnp.bfloat16),
        dimension_numbers=(((1,), (1,)), ((), ())),
        preferred_element_type=jnp.float32)
    tgt = jnp.arange(scores.shape[0]) * n_passages
    logp = jax.nn.log_softmax(scores, axis=-1)
    loss = -jnp.mean(logp[jnp.arange(scores.shape[0]), tgt])
    return loss, scores, q_reps, p_reps


if __name__ == "__main__":
    key = jax.random.PRNGKey(0)
    k1, k2, k3, k4 = jax.random.split(key, 4)

    # small, forward-consistent shapes (lane-dense hidden / projection dims)
    Bq = 4                 # per_device_train_batch_size
    n_passages = 2         # data_args.train_n_passages
    Bp = Bq * n_passages   # passage batch
    Sq, Sp = 8, 16         # query / passage sequence lengths
    H = 128                # projection_in_dim
    D = 128                # projection_out_dim

    # synthetic encoder outputs (last_hidden_state), layout [B, S, H]
    q_hidden = jax.random.normal(k1, (Bq, Sq, H), dtype=jnp.float32)
    p_hidden = jax.random.normal(k2, (Bp, Sp, H), dtype=jnp.float32)

    # deterministic tied LinearPooler params, stored as [H_in, D_out]
    pooler_w = jax.random.normal(k3, (H, D), dtype=jnp.float32) * (1.0 / jnp.sqrt(H))
    pooler_b = jax.random.normal(k4, (D,), dtype=jnp.float32) * 0.01

    out = dense_model_forward(q_hidden, p_hidden, pooler_w, pooler_b, n_passages)
    jax.block_until_ready(out)

    ref_loss, ref_scores, ref_q, ref_p = _reference(
        q_hidden, p_hidden, pooler_w, pooler_b, n_passages
    )
    # bf16 MXU operands (intentional) -> compare at bf16-level tolerance
    assert jnp.allclose(out["q_reps"], ref_q, atol=1e-2, rtol=1e-2)
    assert jnp.allclose(out["p_reps"], ref_p, atol=1e-2, rtol=1e-2)
    assert jnp.allclose(out["scores"], ref_scores, atol=1e-2, rtol=1e-2)
    assert jnp.allclose(out["loss"], ref_loss, atol=1e-2, rtol=1e-2)

    print("KERNEL_OK")
</pallas_src>

<mosaic_0001>
module attributes {stable_mosaic.version = 11 : i64} {
  func.func @_pooler_kernel(%arg0: i32, %arg1: memref<4x128xf32, #tpu.memory_space<vmem>>, %arg2: memref<128x128xbf16, #tpu.memory_space<vmem>>, %arg3: memref<1x128xf32, #tpu.memory_space<vmem>>, %arg4: memref<4x128xf32, #tpu.memory_space<vmem>>, %arg5: memref<4x128xbf16, #tpu.memory_space<vmem>>) attributes {dimension_semantics = [#tpu.dimension_semantics<parallel>], iteration_bounds = array<i64: 1>, scalar_prefetch = 0 : i64, scratch_operands = 0 : i64, tpu.core_type = #tpu.core_type<tc>, window_params = [{transform_indices = @transform_0, window_bounds = array<i64: 4, 128>}, {pipeline_mode = #tpu.pipeline_mode<synchronous>, transform_indices = @transform_1, window_bounds = array<i64: 128, 128>}, {pipeline_mode = #tpu.pipeline_mode<synchronous>, transform_indices = @transform_2, window_bounds = array<i64: 1, 128>}, {transform_indices = @transform_3, window_bounds = array<i64: 4, 128>}, {transform_indices = @transform_4, window_bounds = array<i64: 4, 128>}]} {
    %c0 = arith.constant 0 : index
    %c0_0 = arith.constant 0 : index
    %0 = vector.load %arg1[%c0, %c0_0] : memref<4x128xf32, #tpu.memory_space<vmem>>, vector<4x128xf32>
    %1 = arith.truncf %0 : vector<4x128xf32> to vector<4x128xbf16>
    %c0_1 = arith.constant 0 : index
    %c0_2 = arith.constant 0 : index
    %2 = vector.load %arg2[%c0_1, %c0_2] : memref<128x128xbf16, #tpu.memory_space<vmem>>, vector<128x128xbf16>
    %cst = arith.constant dense<0.000000e+00> : vector<4x128xf32>
    %3 = tpu.matmul %1, %2, %cst {dimension_numbers = #tpu.dot_dimension_numbers<[1], [0], [0], [1], [0, 0, 1, 1], [], []>} : vector<4x128xbf16>, vector<128x128xbf16>, vector<4x128xf32> -> vector<4x128xf32>
    %c0_3 = arith.constant 0 : index
    %c0_4 = arith.constant 0 : index
    %4 = vector.load %arg3[%c0_3, %c0_4] : memref<1x128xf32, #tpu.memory_space<vmem>>, vector<1x128xf32>
    %5 = vector.broadcast %4 : vector<1x128xf32> to vector<4x128xf32>
    %6 = arith.addf %3, %5 : vector<4x128xf32>
    %c0_5 = arith.constant 0 : index
    %c0_6 = arith.constant 0 : index
    %7 = vector.load %arg4[%c0_5, %c0_6] : memref<4x128xf32, #tpu.memory_space<vmem>>, vector<4x128xf32>
    tpu.vector_store %arg4[%c0_5, %c0_6], %6 {strides = array<i32>} : memref<4x128xf32, #tpu.memory_space<vmem>>, vector<4x128xf32>,
    %8 = arith.truncf %6 : vector<4x128xf32> to vector<4x128xbf16>
    %c0_7 = arith.constant 0 : index
    %c0_8 = arith.constant 0 : index
    %9 = vector.load %arg5[%c0_7, %c0_8] : memref<4x128xbf16, #tpu.memory_space<vmem>>, vector<4x128xbf16>
    tpu.vector_store %arg5[%c0_7, %c0_8], %8 {strides = array<i32>} : memref<4x128xbf16, #tpu.memory_space<vmem>>, vector<4x128xbf16>,
    return
  }
  func.func @transform_0(%arg0: i32) -> (i32, i32) {
    %c0_i32 = arith.constant 0 : i32
    %c0_i32_0 = arith.constant 0 : i32
    return %arg0, %c0_i32 : i32, i32
  }
  func.func @transform_1(%arg0: i32) -> (i32, i32) {
    %c0_i32 = arith.constant 0 : i32
    %c0_i32_0 = arith.constant 0 : i32
    %c0_i32_1 = arith.constant 0 : i32
    return %c0_i32, %c0_i32_0 : i32, i32
  }
  func.func @transform_2(%arg0: i32) -> (i32, i32) {
    %c0_i32 = arith.constant 0 : i32
    %c0_i32_0 = arith.constant 0 : i32
    %c0_i32_1 = arith.constant 0 : i32
    return %c0_i32, %c0_i32_0 : i32, i32
  }
  func.func @transform_3(%arg0: i32) -> (i32, i32) {
    %c0_i32 = arith.constant 0 : i32
    %c0_i32_0 = arith.constant 0 : i32
    return %arg0, %c0_i32 : i32, i32
  }
  func.func @transform_4(%arg0: i32) -> (i32, i32) {
    %c0_i32 = arith.constant 0 : i32
    %c0_i32_0 = arith.constant 0 : i32
    return %arg0, %c0_i32 : i32, i32
  }
}

</mosaic_0001>

<bundles_post_ra>
// kernel: tpu_custom_call.1
= control target key start
LH: loop header
LB: loop body
LE: loop exit
PB: predicated region body
PF: predicated region fallthrough
CT: control target
= control target key end

     0   :  { %10 = vsyncpa [#allocation3], 0  ;;  %s365_s0 = inlined_call_operand.hbm [shape: f32[4,128], index: 0, kind: input, shape index: {}]   ;;  %s366_s1 = inlined_call_operand.hbm [shape: bf16[128,128], index: 1, kind: input, shape index: {}]   ;;  %s367_s2 = inlined_call_operand.vmem [shape: f32[1,128], index: 2, kind: input, shape index: {}]   ;;  %s368_s3 = inlined_call_operand.hbm [shape: f32[4,128], index: 3, kind: output, shape index: {0}]   ;;  %s369_s4 = inlined_call_operand.hbm [shape: bf16[4,128], index: 4, kind: output, shape index: {1}]  }
   0x1   :  { %11 = vsyncpa [#allocation6], 0 }
   0x2   :  { %12 = vsyncpa [#allocation4], 0 }
   0x3   :  { %13 = vsyncpa [#allocation9], 0  ;;  %s19_s17 = sshll.u32 %s365_s0, 4  ;;  %s319_s18 = smov [#allocation2]   ;;  %s20_s17 = int_to_ptr.hbm [resolvable:$true] %s19_s17 }
   0x4   :  { %s21_s19 = sshll.u32 %s319_s18, 4  ;;  %s29_s22 = sshll.u32 %s366_s1, 4  ;;  %s22_s19 = int_to_ptr.vmem [resolvable:$true] %s21_s19  ;;  %s30_s22 = int_to_ptr.hbm [resolvable:$true] %s29_s22 }
   0x5   :  { %24 = dma.hbm_to_vmem [thread:$0]  %s20_s17, 64, %s22_s19, [#allocation3]  }
   0x6   :  { %s320_s23 = smov [#allocation5]   ;;  %s321_s25 = smov 64  }
   0x7   :  { %s31_s24 = sshll.u32 %s320_s23, 4  ;;  %s322_s26 = smov 4   ;;  %s32_s24 = int_to_ptr.vmem [resolvable:$true] %s31_s24 }
   0x8   :  { %37 = dma.hbm_to_vmem [thread:$0]  %s30_s22, 1024, %s32_s24, [#allocation6], %s321_s25, %s321_s25, %s322_s26  }
   0x9   :  { %311 = dma.done.wait [#allocation3], 64  }
   0xa   :  { %312 = vsyncadd [#allocation3], 4294967232 }
   0xb   :  { %313 = dma.done.wait [#allocation6], 1024  }
   0xc   :  { %314 = vsyncadd [#allocation6], 4294966272  ;;  %v207_v0 = vld [vmem:[#allocation5 + $0x38] sm:$0xff]  ;;  %v206_v1 = vld [vmem:[#allocation5 + $0x30] sm:$0xff]  ;;  %s323_s27 = smov [#allocation7]   ;;  %s141_s5 = sshll.u32 %s368_s3, 4  ;;  %s142_s5 = int_to_ptr.hbm [resolvable:$true] %s141_s5 }
   0xd   :  { %118 = vmatpush.bf16.msra.mxu0 %v207_v0  ;;  %v205_v2 = vld [vmem:[#allocation5 + $0x28] sm:$0xff]  ;;  %v204_v3 = vld [vmem:[#allocation5 + $0x20] sm:$0xff]  ;;  %v203_v4 = vld [vmem:[#allocation5 + $0x18] sm:$0xff]  ;;  %s139_s28 = sshll.u32 %s323_s27, 4  ;;  %s324_s6 = smov [#allocation8]   ;;  %s140_s28 = int_to_ptr.vmem [resolvable:$true] %s139_s28 }
   0xe   :  { %v202_v5 = vld [vmem:[#allocation5 + $0x10] sm:$0xff]  ;;  %v201_v6 = vld [vmem:[#allocation5 + $0x8] sm:$0xff]  ;;  %v200_v7 = vld [vmem:[#allocation5] sm:$0xff]  ;;  %s150_s7 = sshll.u32 %s324_s6, 4  ;;  %s152_s10 = sshll.u32 %s369_s4, 4  ;;  %s151_s7 = int_to_ptr.vmem [resolvable:$true] %s150_s7  ;;  %s153_s10 = int_to_ptr.hbm [resolvable:$true] %s152_s10 }
   0xf   :  { %v48_v8 = vld [vmem:[#allocation2] sm:$0xf] }
  0x10   :  { %v49_v9 = vpack.c.bf16 %v48_v8, %v48_v8  ;;  %v214_v10 = vld [vmem:[%s367_s2] ss:$0 sm:$0xff] }
  0x11   :  { %119 = vmatpush.bf16.msra.mxu0 %v206_v1 }
  0x15   :  { %120 = vmatpush.bf16.msra.mxu0 %v205_v2 }
  0x19   :  { %121 = vmatpush.bf16.msra.mxu0 %v204_v3 }
  0x1d   :  { %122 = vmatpush.bf16.msra.mxu0 %v203_v4 }
  0x21   :  { %123 = vmatpush.bf16.msra.mxu0 %v202_v5 }
  0x25   :  { %124 = vmatpush.bf16.msra.mxu0 %v201_v6 }
  0x29   :  { %125 = vmatpush.bf16.msra.mxu0 %v200_v7 }
  0x2c   :  { %126 = vmatmul.bf16.vlgmr.msra.gmra.mxu0 %v49_v9 }
  0xa9   :  { %v127_v11 = vpop.f32.mrf.mxu0 }
  0xaa   :  { %v128_v12 = vadd.f32 %v214_v10, %v127_v11 }
  0xac   :  { %131 = vst [vmem:[#allocation7] sm:$0xf] %v128_v12  ;;  %v132_v13 = vpack.c.bf16 %v128_v12, %v128_v12 }
  0xad   :  { %144 = dma.vmem_to_hbm [thread:$0]  %s140_s28, 64, %s142_s5, [#allocation4]  }
  0xae   :  { %133 = vst [vmem:[#allocation8] sm:$0x3] %v132_v13 }
  0xaf   :  { %155 = dma.vmem_to_hbm [thread:$0]  %s151_s7, 32, %s153_s10, [#allocation9]  }
  0xb1   :  { %v129_v14 = vpop.f32.mrf.mxu0 }
  0xb2   :  { %315 = dma.done.wait [#allocation4], 64  }
  0xb3   :  { %316 = vsyncadd [#allocation4], 4294967232 }
  0xb4   :  { %317 = dma.done.wait [#allocation9], 32  }
  0xb5   :  { %318 = vsyncadd [#allocation9], 4294967264 }
  0xb6   :  { %164 = vsyncpa [#allocation3], 1 }
  0xb7   :  { %165 = vsyncpa [#allocation6], 1 }
  0xb8   :  { %166 = vsyncpa [#allocation4], 1 }
  0xb9   :  { %167 = vsyncpa [#allocation9], 1 }

</bundles_post_ra>
